<compile_context>
chip_gen: v7x
topology: tpu7x:2x2x1
jax: 0.10.0
libtpu: 0.0.40
codegen_flags: <defaults>
</compile_context>

<pallas_src>
import functools

import jax
import jax.numpy as jnp
from jax import lax
from jax.experimental import pallas as pl
from jax.experimental.pallas import tpu as pltpu

EPS = 1e-5


def double13_kernel(x_ref, w_ref, gb_ref, o_ref, xpad_ref, *, img_h, img_w):
    # x_ref   : (N, Cin, H*W)          f32, pure reshape of NCHW (lane = H*W)
    # w_ref   : (5, 2*Cout_p, Cin_p)   bf16 packed tap weights, rows = [A ; B]
    #           tap 0 = centre (both), 1 = w-1 (A), 2 = w+1 (A),
    #           3 = h-1 (B), 4 = h+1 (B)
    # gb_ref  : (2, 2*Cout_p, 1)       f32 [gamma ; beta] (merged single DMA)
    # o_ref   : (N, Cout_p, H*W)       f32 fused output (branch sum)
    # xpad_ref: (Cin_p, H*W)           f32 VMEM scratch for K zero-padding
    n, cin, hw = x_ref.shape
    cout_p = o_ref.shape[1]

    # Per-position tap-validity masks along the flattened H*W (lane) axis,
    # shared by all images.  Applied post-matmul in f32 (v5e-safe).
    col = lax.broadcasted_iota(jnp.int32, (1, hw), 1)
    wpos = col % img_w
    m_l = (wpos > 0).astype(jnp.float32)                   # w-1 exists
    m_r = (wpos < img_w - 1).astype(jnp.float32)           # w+1 exists
    m_u = (col >= img_w).astype(jnp.float32)               # h-1 exists
    m_d = (col < (img_h - 1) * img_w).astype(jnp.float32)  # h+1 exists

    dot = functools.partial(jnp.dot, preferred_element_type=jnp.float32)

    # Zero the K-padding rows once; the real Cin rows are overwritten below.
    xpad_ref[...] = jnp.zeros_like(xpad_ref)

    inv_cnt = 1.0 / float(n * hw)
    accs = []
    s = jnp.zeros((2 * cout_p, 1), jnp.float32)
    ss = jnp.zeros((2 * cout_p, 1), jnp.float32)

    # N is small and static here -> unrolled Python loop.
    # TODO(synk): grid this loop (with megacore 'parallel' axis + scratch stat
    # accumulation) for production-sized N*H*W.
    for i in range(n):
        # Zero-padded, sublane-aligned activation slab for image i.
        xpad_ref[:cin, :] = x_ref[i]
        xf = xpad_ref[...]                                 # (Cin_p, HW) f32

        # Five unique shifted views via lane rotations (XLU slot, ~free).
        # Boundary taps are cancelled after the matmul with the f32 masks.
        # bf16 only at the MXU operands; rolls / masks / BN stay f32.
        x_c = xf.astype(jnp.bfloat16)
        x_l = pltpu.roll(xf, 1, 1).astype(jnp.bfloat16)            # x[.., w-1]
        x_r = pltpu.roll(xf, hw - 1, 1).astype(jnp.bfloat16)       # x[.., w+1]
        x_u = pltpu.roll(xf, img_w, 1).astype(jnp.bfloat16)        # x[h-1, ..]
        x_d = pltpu.roll(xf, hw - img_w, 1).astype(jnp.bfloat16)   # x[h+1, ..]

        # One fused accumulator for both conv branches: rows [A ; B].
        acc = dot(w_ref[0], x_c)
        acc += m_l * dot(w_ref[1], x_l)
        acc += m_r * dot(w_ref[2], x_r)
        acc += m_u * dot(w_ref[3], x_u)
        acc += m_d * dot(w_ref[4], x_d)
        accs.append(acc)

        s = s + jnp.sum(acc, axis=1, keepdims=True)
        ss = ss + jnp.sum(acc * acc, axis=1, keepdims=True)

    # Training-mode BatchNorm for both branches at once (all f32).
    mean = s * inv_cnt
    # Clamp: E[x^2] - E[x]^2 can go slightly negative from f32 cancellation.
    var = jnp.maximum(ss * inv_cnt - mean * mean, 0.0)
    scale = gb_ref[0] * lax.rsqrt(var + EPS)               # gamma folded in
    shift = gb_ref[1] - mean * scale                       # beta folded in

    for i in range(n):
        y = jnp.maximum(accs[i] * scale + shift, 0.0)      # BN + ReLU
        # Branch A + branch B; split is on an 8-row (f32 sublane) boundary.
        o_ref[i] = y[:cout_p, :] + y[cout_p:, :]           # lane-dense store


def double13_forward(x_nchw, params):
    """x_nchw: (N, Cin, H, W) float32. Returns (N, Cout, H, W) float32."""
    wa, ba, wb, bb, gamma_a, beta_a, gamma_b, beta_b = params
    del ba, bb  # exactly cancelled by training-mode (batch-statistic) BN
    # TODO(synk): reinstate conv biases if reused with eval-mode/running-stat BN.

    N, Cin, H, W = x_nchw.shape
    Cout = wa.shape[0]
    HW = H * W

    # K padded to a bf16 packing multiple of 16; Cout padded to the f32
    # sublane multiple of 8 so the in-kernel branch split stays tile-aligned.
    cin_p = -(-Cin // 16) * 16
    cout_p = -(-Cout // 8) * 8

    # Activation: a pure reshape -- no transpose, no im2col, no dtype copy.
    x_flat = x_nchw.astype(jnp.float32).reshape(N, Cin, HW)

    # Pack the 5 unique tap weights (centre tap shared by both branches) into
    # one small bf16 operand (5, 2*cout_p, cin_p), rows = [branch A ; branch B].
    wa_t = wa.astype(jnp.float32)[:, :, 0, :]   # (Cout, Cin, 3) over kw
    wb_t = wb.astype(jnp.float32)[:, :, :, 0]   # (Cout, Cin, 3) over kh

    def tap(block_a, block_b):
        t = jnp.zeros((2 * cout_p, cin_p), jnp.float32)
        if block_a is not None:
            t = t.at[:Cout, :Cin].set(block_a)
        if block_b is not None:
            t = t.at[cout_p:cout_p + Cout, :Cin].set(block_b)
        return t

    w_taps = jnp.stack([
        tap(wa_t[:, :, 1], wb_t[:, :, 1]),   # centre tap (both branches)
        tap(wa_t[:, :, 0], None),            # w-1  (branch A only)
        tap(wa_t[:, :, 2], None),            # w+1  (branch A only)
        tap(None, wb_t[:, :, 0]),            # h-1  (branch B only)
        tap(None, wb_t[:, :, 2]),            # h+1  (branch B only)
    ]).astype(jnp.bfloat16)

    # gamma/beta merged into a single tiny operand (one DMA instead of two).
    def chan(va, vb):
        v = jnp.zeros((2 * cout_p,), jnp.float32)
        return v.at[:Cout].set(va).at[cout_p:cout_p + Cout].set(vb)

    gb_packed = jnp.stack([chan(gamma_a, gamma_b),
                           chan(beta_a, beta_b)]).reshape(2, 2 * cout_p, 1)

    vmem = pl.BlockSpec(memory_space=pltpu.MemorySpace.VMEM)
    out_flat = pl.pallas_call(
        functools.partial(double13_kernel, img_h=H, img_w=W),
        out_shape=jax.ShapeDtypeStruct((N, cout_p, HW), jnp.float32),
        in_specs=[vmem, vmem, vmem],
        out_specs=vmem,
        scratch_shapes=[pltpu.VMEM((cin_p, HW), jnp.float32)],
        compiler_params=pltpu.CompilerParams(
            vmem_limit_bytes=32 * 1024 * 1024),
    )(x_flat, w_taps, gb_packed)

    # Channel slice is a no-op when Cout is already a multiple of 8; the
    # reshape back to NCHW is free (no transpose needed in this layout).
    return out_flat[:, :Cout, :].reshape(N, Cout, H, W)


def reference_forward(x_nchw, params):
    """Pure-JAX reference matching PyTorch Double13 (training-mode BN)."""
    wa, ba, wb, bb, ga, bta, gb, btb = params

    def branch(w, b, gamma, beta, pad):
        y = lax.conv_general_dilated(
            x_nchw, w, window_strides=(1, 1), padding=pad,
            dimension_numbers=("NCHW", "OIHW", "NCHW"))
        y = y + b[None, :, None, None]
        m = y.mean(axis=(0, 2, 3), keepdims=True)
        v = ((y - m) ** 2).mean(axis=(0, 2, 3), keepdims=True)
        y = gamma[None, :, None, None] * (y - m) / jnp.sqrt(v + EPS) \
            + beta[None, :, None, None]
        return jnp.maximum(y, 0.0)

    ya = branch(wa, ba, ga, bta, ((0, 0), (1, 1)))
    yb = branch(wb, bb, gb, btb, ((1, 1), (0, 0)))
    return ya + yb


if __name__ == "__main__":
    N, Cin, Cout, H, W = 2, 4, 8, 16, 16

    key = jax.random.PRNGKey(0)
    kx, kwa, kba, kwb, kbb = jax.random.split(key, 5)

    x = jax.random.normal(kx, (N, Cin, H, W), jnp.float32)

    # deterministic parameter init (shapes follow the PyTorch module)
    wa = 0.1 * jax.random.normal(kwa, (Cout, Cin, 1, 3), jnp.float32)
    ba = 0.1 * jax.random.normal(kba, (Cout,), jnp.float32)
    wb = 0.1 * jax.random.normal(kwb, (Cout, Cin, 3, 1), jnp.float32)
    bb = 0.1 * jax.random.normal(kbb, (Cout,), jnp.float32)
    ga = jnp.ones((Cout,), jnp.float32)    # BatchNorm2d default weight
    bta = jnp.zeros((Cout,), jnp.float32)  # BatchNorm2d default bias
    gb = jnp.ones((Cout,), jnp.float32)
    btb = jnp.zeros((Cout,), jnp.float32)

    params = (wa, ba, wb, bb, ga, bta, gb, btb)

    out = jax.block_until_ready(jax.jit(double13_forward)(x, params))
    ref = jax.block_until_ready(reference_forward(x, params))

    assert out.shape == (N, Cout, H, W)
    # bf16 MXU operands (f32 accumulation + f32 BN) vs. a pure-f32 reference
    # -> bf16-level tolerance.
    err = jnp.max(jnp.abs(out - ref))
    assert jnp.allclose(out, ref, atol=5e-2, rtol=5e-2), f"max abs err {err}"

    print("KERNEL_OK")
</pallas_src>

<mosaic_0001>
module attributes {stable_mosaic.version = 11 : i64} {
  func.func @double13_kernel(%arg0: memref<2x4x256xf32, #tpu.memory_space<vmem>>, %arg1: memref<5x16x16xbf16, #tpu.memory_space<vmem>>, %arg2: memref<2x16x1xf32, #tpu.memory_space<vmem>>, %arg3: memref<2x8x256xf32, #tpu.memory_space<vmem>>, %arg4: memref<16x256xf32, #tpu.memory_space<vmem>>) attributes {dimension_semantics = [], scalar_prefetch = 0 : i64, scratch_operands = 1 : i64, tpu.core_type = #tpu.core_type<tc>} {
    %0 = tpu.iota {dimensions = array<i32: 1>} : vector<1x256xi32>
    %c16_i32 = arith.constant 16 : i32
    %c0_i32 = arith.constant 0 : i32
    %1 = arith.cmpi eq, %c16_i32, %c0_i32 : i32
    %c1_i32 = arith.constant 1 : i32
    %2 = arith.select %1, %c1_i32, %c16_i32 : i32
    %3 = vector.broadcast %2 : i32 to vector<1x256xi32>
    %4 = arith.remsi %0, %3 : vector<1x256xi32>
    %c0_i32_0 = arith.constant 0 : i32
    %5 = vector.broadcast %c0_i32_0 : i32 to vector<1x256xi32>
    %6 = arith.cmpi ne, %4, %5 : vector<1x256xi32>
    %c0_i32_1 = arith.constant 0 : i32
    %7 = vector.broadcast %c0_i32_1 : i32 to vector<1x256xi32>
    %8 = arith.cmpi slt, %4, %7 : vector<1x256xi32>
    %c0_i32_2 = arith.constant 0 : i32
    %9 = arith.cmpi slt, %2, %c0_i32_2 : i32
    %10 = vector.broadcast %9 : i1 to vector<1x256xi1>
    %11 = vector.broadcast %10 : vector<1x256xi1> to vector<1x256xi1>
    %12 = arith.xori %8, %11 : vector<1x256xi1>
    %13 = arith.andi %12, %6 : vector<1x256xi1>
    %14 = vector.broadcast %2 : i32 to vector<1x256xi32>
    %15 = arith.addi %4, %14 : vector<1x256xi32>
    %16 = arith.select %13, %15, %4 : vector<1x256xi1>, vector<1x256xi32>
    %c0_i32_3 = arith.constant 0 : i32
    %17 = vector.broadcast %c0_i32_3 : i32 to vector<1x256xi32>
    %18 = arith.cmpi sgt, %16, %17 : vector<1x256xi32>
    %19 = arith.extui %18 : vector<1x256xi1> to vector<1x256xi32>
    %20 = arith.sitofp %19 : vector<1x256xi32> to vector<1x256xf32>
    %c15_i32 = arith.constant 15 : i32
    %21 = vector.broadcast %c15_i32 : i32 to vector<1x256xi32>
    %22 = arith.cmpi slt, %16, %21 : vector<1x256xi32>
    %23 = arith.extui %22 : vector<1x256xi1> to vector<1x256xi32>
    %24 = arith.sitofp %23 : vector<1x256xi32> to vector<1x256xf32>
    %c16_i32_4 = arith.constant 16 : i32
    %25 = vector.broadcast %c16_i32_4 : i32 to vector<1x256xi32>
    %26 = arith.cmpi sge, %0, %25 : vector<1x256xi32>
    %27 = arith.extui %26 : vector<1x256xi1> to vector<1x256xi32>
    %28 = arith.sitofp %27 : vector<1x256xi32> to vector<1x256xf32>
    %c240_i32 = arith.constant 240 : i32
    %29 = vector.broadcast %c240_i32 : i32 to vector<1x256xi32>
    %30 = arith.cmpi slt, %0, %29 : vector<1x256xi32>
    %31 = arith.extui %30 : vector<1x256xi1> to vector<1x256xi32>
    %32 = arith.sitofp %31 : vector<1x256xi32> to vector<1x256xf32>
    %cst = arith.constant 0.000000e+00 : f32
    %33 = vector.broadcast %cst : f32 to vector<16x256xf32>
    %c0 = arith.constant 0 : index
    %c0_5 = arith.constant 0 : index
    %34 = vector.load %arg4[%c0, %c0_5] : memref<16x256xf32, #tpu.memory_space<vmem>>, vector<16x256xf32>
    tpu.vector_store %arg4[%c0, %c0_5], %33 {strides = array<i32>} : memref<16x256xf32, #tpu.memory_space<vmem>>, vector<16x256xf32>,
    %cst_6 = arith.constant 0.000000e+00 : f32
    %35 = vector.broadcast %cst_6 : f32 to vector<16x1xf32>
    %cst_7 = arith.constant 0.000000e+00 : f32
    %36 = vector.broadcast %cst_7 : f32 to vector<16x1xf32>
    %c0_8 = arith.constant 0 : index
    %c0_9 = arith.constant 0 : index
    %c0_10 = arith.constant 0 : index
    %37 = vector.load %arg0[%c0_8, %c0_9, %c0_10] : memref<2x4x256xf32, #tpu.memory_space<vmem>>, vector<1x4x256xf32>
    %38 = vector.shape_cast %37 : vector<1x4x256xf32> to vector<4x256xf32>
    %c0_11 = arith.constant 0 : index
    %c0_12 = arith.constant 0 : index
    %39 = vector.load %arg4[%c0_11, %c0_12] : memref<16x256xf32, #tpu.memory_space<vmem>>, vector<4x256xf32>
    tpu.vector_store %arg4[%c0_11, %c0_12], %38 {strides = array<i32>} : memref<16x256xf32, #tpu.memory_space<vmem>>, vector<4x256xf32>,
    %c0_13 = arith.constant 0 : index
    %c0_14 = arith.constant 0 : index
    %40 = vector.load %arg4[%c0_13, %c0_14] : memref<16x256xf32, #tpu.memory_space<vmem>>, vector<16x256xf32>
    %41 = arith.truncf %40 : vector<16x256xf32> to vector<16x256xbf16>
    %c1_i32_15 = arith.constant 1 : i32
    %42 = tpu.dynamic_rotate %40 by %c1_i32_15 dim 1 : vector<16x256xf32>, i32 -> vector<16x256xf32>
    %43 = arith.truncf %42 : vector<16x256xf32> to vector<16x256xbf16>
    %c255_i32 = arith.constant 255 : i32
    %44 = tpu.dynamic_rotate %40 by %c255_i32 dim 1 : vector<16x256xf32>, i32 -> vector<16x256xf32>
    %45 = arith.truncf %44 : vector<16x256xf32> to vector<16x256xbf16>
    %c16_i32_16 = arith.constant 16 : i32
    %46 = tpu.dynamic_rotate %40 by %c16_i32_16 dim 1 : vector<16x256xf32>, i32 -> vector<16x256xf32>
    %47 = arith.truncf %46 : vector<16x256xf32> to vector<16x256xbf16>
    %c240_i32_17 = arith.constant 240 : i32
    %48 = tpu.dynamic_rotate %40 by %c240_i32_17 dim 1 : vector<16x256xf32>, i32 -> vector<16x256xf32>
    %49 = arith.truncf %48 : vector<16x256xf32> to vector<16x256xbf16>
    %c0_18 = arith.constant 0 : index
    %c0_19 = arith.constant 0 : index
    %c0_20 = arith.constant 0 : index
    %50 = vector.load %arg1[%c0_18, %c0_19, %c0_20] : memref<5x16x16xbf16, #tpu.memory_space<vmem>>, vector<1x16x16xbf16>
    %51 = vector.shape_cast %50 : vector<1x16x16xbf16> to vector<16x16xbf16>
    %cst_21 = arith.constant dense<0.000000e+00> : vector<16x256xf32>
    %52 = tpu.matmul %51, %41, %cst_21 {dimension_numbers = #tpu.dot_dimension_numbers<[1], [0], [0], [1], [0, 0, 1, 1], [], []>} : vector<16x16xbf16>, vector<16x256xbf16>, vector<16x256xf32> -> vector<16x256xf32>
    %c1 = arith.constant 1 : index
    %c0_22 = arith.constant 0 : index
    %c0_23 = arith.constant 0 : index
    %53 = vector.load %arg1[%c1, %c0_22, %c0_23] : memref<5x16x16xbf16, #tpu.memory_space<vmem>>, vector<1x16x16xbf16>
    %54 = vector.shape_cast %53 : vector<1x16x16xbf16> to vector<16x16xbf16>
    %cst_24 = arith.constant dense<0.000000e+00> : vector<16x256xf32>
    %55 = tpu.matmul %54, %43, %cst_24 {dimension_numbers = #tpu.dot_dimension_numbers<[1], [0], [0], [1], [0, 0, 1, 1], [], []>} : vector<16x16xbf16>, vector<16x256xbf16>, vector<16x256xf32> -> vector<16x256xf32>
    %56 = vector.broadcast %20 : vector<1x256xf32> to vector<16x256xf32>
    %57 = arith.mulf %56, %55 : vector<16x256xf32>
    %58 = arith.addf %52, %57 : vector<16x256xf32>
    %c2 = arith.constant 2 : index
    %c0_25 = arith.constant 0 : index
    %c0_26 = arith.constant 0 : index
    %59 = vector.load %arg1[%c2, %c0_25, %c0_26] : memref<5x16x16xbf16, #tpu.memory_space<vmem>>, vector<1x16x16xbf16>
    %60 = vector.shape_cast %59 : vector<1x16x16xbf16> to vector<16x16xbf16>
    %cst_27 = arith.constant dense<0.000000e+00> : vector<16x256xf32>
    %61 = tpu.matmul %60, %45, %cst_27 {dimension_numbers = #tpu.dot_dimension_numbers<[1], [0], [0], [1], [0, 0, 1, 1], [], []>} : vector<16x16xbf16>, vector<16x256xbf16>, vector<16x256xf32> -> vector<16x256xf32>
    %62 = vector.broadcast %24 : vector<1x256xf32> to vector<16x256xf32>
    %63 = arith.mulf %62, %61 : vector<16x256xf32>
    %64 = arith.addf %58, %63 : vector<16x256xf32>
    %c3 = arith.constant 3 : index
    %c0_28 = arith.constant 0 : index
    %c0_29 = arith.constant 0 : index
    %65 = vector.load %arg1[%c3, %c0_28, %c0_29] : memref<5x16x16xbf16, #tpu.memory_space<vmem>>, vector<1x16x16xbf16>
    %66 = vector.shape_cast %65 : vector<1x16x16xbf16> to vector<16x16xbf16>
    %cst_30 = arith.constant dense<0.000000e+00> : vector<16x256xf32>
    %67 = tpu.matmul %66, %47, %cst_30 {dimension_numbers = #tpu.dot_dimension_numbers<[1], [0], [0], [1], [0, 0, 1, 1], [], []>} : vector<16x16xbf16>, vector<16x256xbf16>, vector<16x256xf32> -> vector<16x256xf32>
    %68 = vector.broadcast %28 : vector<1x256xf32> to vector<16x256xf32>
    %69 = arith.mulf %68, %67 : vector<16x256xf32>
    %70 = arith.addf %64, %69 : vector<16x256xf32>
    %c4 = arith.constant 4 : index
    %c0_31 = arith.constant 0 : index
    %c0_32 = arith.constant 0 : index
    %71 = vector.load %arg1[%c4, %c0_31, %c0_32] : memref<5x16x16xbf16, #tpu.memory_space<vmem>>, vector<1x16x16xbf16>
    %72 = vector.shape_cast %71 : vector<1x16x16xbf16> to vector<16x16xbf16>
    %cst_33 = arith.constant dense<0.000000e+00> : vector<16x256xf32>
    %73 = tpu.matmul %72, %49, %cst_33 {dimension_numbers = #tpu.dot_dimension_numbers<[1], [0], [0], [1], [0, 0, 1, 1], [], []>} : vector<16x16xbf16>, vector<16x256xbf16>, vector<16x256xf32> -> vector<16x256xf32>
    %74 = vector.broadcast %32 : vector<1x256xf32> to vector<16x256xf32>
    %75 = arith.mulf %74, %73 : vector<16x256xf32>
    %76 = arith.addf %70, %75 : vector<16x256xf32>
    %cst_34 = arith.constant dense<0.000000e+00> : vector<16xf32>
    %77 = vector.multi_reduction <add>, %76, %cst_34 [1] : vector<16x256xf32> to vector<16xf32>
    %78 = vector.shape_cast %77 : vector<16xf32> to vector<16x1xf32>
    %79 = arith.addf %35, %78 : vector<16x1xf32>
    %80 = arith.mulf %76, %76 : vector<16x256xf32>
    %cst_35 = arith.constant dense<0.000000e+00> : vector<16xf32>
    %81 = vector.multi_reduction <add>, %80, %cst_35 [1] : vector<16x256xf32> to vector<16xf32>
    %82 = vector.shape_cast %81 : vector<16xf32> to vector<16x1xf32>
    %83 = arith.addf %36, %82 : vector<16x1xf32>
    %c1_36 = arith.constant 1 : index
    %c0_37 = arith.constant 0 : index
    %c0_38 = arith.constant 0 : index
    %84 = vector.load %arg0[%c1_36, %c0_37, %c0_38] : memref<2x4x256xf32, #tpu.memory_space<vmem>>, vector<1x4x256xf32>
    %85 = vector.shape_cast %84 : vector<1x4x256xf32> to vector<4x256xf32>
    %c0_39 = arith.constant 0 : index
    %c0_40 = arith.constant 0 : index
    %86 = vector.load %arg4[%c0_39, %c0_40] : memref<16x256xf32, #tpu.memory_space<vmem>>, vector<4x256xf32>
    tpu.vector_store %arg4[%c0_39, %c0_40], %85 {strides = array<i32>} : memref<16x256xf32, #tpu.memory_space<vmem>>, vector<4x256xf32>,
    %c0_41 = arith.constant 0 : index
    %c0_42 = arith.constant 0 : index
    %87 = vector.load %arg4[%c0_41, %c0_42] : memref<16x256xf32, #tpu.memory_space<vmem>>, vector<16x256xf32>
    %88 = arith.truncf %87 : vector<16x256xf32> to vector<16x256xbf16>
    %c1_i32_43 = arith.constant 1 : i32
    %89 = tpu.dynamic_rotate %87 by %c1_i32_43 dim 1 : vector<16x256xf32>, i32 -> vector<16x256xf32>
    %90 = arith.truncf %89 : vector<16x256xf32> to vector<16x256xbf16>
    %c255_i32_44 = arith.constant 255 : i32
    %91 = tpu.dynamic_rotate %87 by %c255_i32_44 dim 1 : vector<16x256xf32>, i32 -> vector<16x256xf32>
    %92 = arith.truncf %91 : vector<16x256xf32> to vector<16x256xbf16>
    %c16_i32_45 = arith.constant 16 : i32
    %93 = tpu.dynamic_rotate %87 by %c16_i32_45 dim 1 : vector<16x256xf32>, i32 -> vector<16x256xf32>
    %94 = arith.truncf %93 : vector<16x256xf32> to vector<16x256xbf16>
    %c240_i32_46 = arith.constant 240 : i32
    %95 = tpu.dynamic_rotate %87 by %c240_i32_46 dim 1 : vector<16x256xf32>, i32 -> vector<16x256xf32>
    %96 = arith.truncf %95 : vector<16x256xf32> to vector<16x256xbf16>
    %c0_47 = arith.constant 0 : index
    %c0_48 = arith.constant 0 : index
    %c0_49 = arith.constant 0 : index
    %97 = vector.load %arg1[%c0_47, %c0_48, %c0_49] : memref<5x16x16xbf16, #tpu.memory_space<vmem>>, vector<1x16x16xbf16>
    %98 = vector.shape_cast %97 : vector<1x16x16xbf16> to vector<16x16xbf16>
    %cst_50 = arith.constant dense<0.000000e+00> : vector<16x256xf32>
    %99 = tpu.matmul %98, %88, %cst_50 {dimension_numbers = #tpu.dot_dimension_numbers<[1], [0], [0], [1], [0, 0, 1, 1], [], []>} : vector<16x16xbf16>, vector<16x256xbf16>, vector<16x256xf32> -> vector<16x256xf32>
    %c1_51 = arith.constant 1 : index
    %c0_52 = arith.constant 0 : index
    %c0_53 = arith.constant 0 : index
    %100 = vector.load %arg1[%c1_51, %c0_52, %c0_53] : memref<5x16x16xbf16, #tpu.memory_space<vmem>>, vector<1x16x16xbf16>
    %101 = vector.shape_cast %100 : vector<1x16x16xbf16> to vector<16x16xbf16>
    %cst_54 = arith.constant dense<0.000000e+00> : vector<16x256xf32>
    %102 = tpu.matmul %101, %90, %cst_54 {dimension_numbers = #tpu.dot_dimension_numbers<[1], [0], [0], [1], [0, 0, 1, 1], [], []>} : vector<16x16xbf16>, vector<16x256xbf16>, vector<16x256xf32> -> vector<16x256xf32>
    %103 = vector.broadcast %20 : vector<1x256xf32> to vector<16x256xf32>
    %104 = arith.mulf %103, %102 : vector<16x256xf32>
    %105 = arith.addf %99, %104 : vector<16x256xf32>
    %c2_55 = arith.constant 2 : index
    %c0_56 = arith.constant 0 : index
    %c0_57 = arith.constant 0 : index
    %106 = vector.load %arg1[%c2_55, %c0_56, %c0_57] : memref<5x16x16xbf16, #tpu.memory_space<vmem>>, vector<1x16x16xbf16>
    %107 = vector.shape_cast %106 : vector<1x16x16xbf16> to vector<16x16xbf16>
    %cst_58 = arith.constant dense<0.000000e+00> : vector<16x256xf32>
    %108 = tpu.matmul %107, %92, %cst_58 {dimension_numbers = #tpu.dot_dimension_numbers<[1], [0], [0], [1], [0, 0, 1, 1], [], []>} : vector<16x16xbf16>, vector<16x256xbf16>, vector<16x256xf32> -> vector<16x256xf32>
    %109 = vector.broadcast %24 : vector<1x256xf32> to vector<16x256xf32>
    %110 = arith.mulf %109, %108 : vector<16x256xf32>
    %111 = arith.addf %105, %110 : vector<16x256xf32>
    %c3_59 = arith.constant 3 : index
    %c0_60 = arith.constant 0 : index
    %c0_61 = arith.constant 0 : index
    %112 = vector.load %arg1[%c3_59, %c0_60, %c0_61] : memref<5x16x16xbf16, #tpu.memory_space<vmem>>, vector<1x16x16xbf16>
    %113 = vector.shape_cast %112 : vector<1x16x16xbf16> to vector<16x16xbf16>
    %cst_62 = arith.constant dense<0.000000e+00> : vector<16x256xf32>
    %114 = tpu.matmul %113, %94, %cst_62 {dimension_numbers = #tpu.dot_dimension_numbers<[1], [0], [0], [1], [0, 0, 1, 1], [], []>} : vector<16x16xbf16>, vector<16x256xbf16>, vector<16x256xf32> -> vector<16x256xf32>
    %115 = vector.broadcast %28 : vector<1x256xf32> to vector<16x256xf32>
    %116 = arith.mulf %115, %114 : vector<16x256xf32>
    %117 = arith.addf %111, %116 : vector<16x256xf32>
    %c4_63 = arith.constant 4 : index
    %c0_64 = arith.constant 0 : index
    %c0_65 = arith.constant 0 : index
    %118 = vector.load %arg1[%c4_63, %c0_64, %c0_65] : memref<5x16x16xbf16, #tpu.memory_space<vmem>>, vector<1x16x16xbf16>
    %119 = vector.shape_cast %118 : vector<1x16x16xbf16> to vector<16x16xbf16>
    %cst_66 = arith.constant dense<0.000000e+00> : vector<16x256xf32>
    %120 = tpu.matmul %119, %96, %cst_66 {dimension_numbers = #tpu.dot_dimension_numbers<[1], [0], [0], [1], [0, 0, 1, 1], [], []>} : vector<16x16xbf16>, vector<16x256xbf16>, vector<16x256xf32> -> vector<16x256xf32>
    %121 = vector.broadcast %32 : vector<1x256xf32> to vector<16x256xf32>
    %122 = arith.mulf %121, %120 : vector<16x256xf32>
    %123 = arith.addf %117, %122 : vector<16x256xf32>
    %cst_67 = arith.constant dense<0.000000e+00> : vector<16xf32>
    %124 = vector.multi_reduction <add>, %123, %cst_67 [1] : vector<16x256xf32> to vector<16xf32>
    %125 = vector.shape_cast %124 : vector<16xf32> to vector<16x1xf32>
    %126 = arith.addf %79, %125 : vector<16x1xf32>
    %127 = arith.mulf %123, %123 : vector<16x256xf32>
    %cst_68 = arith.constant dense<0.000000e+00> : vector<16xf32>
    %128 = vector.multi_reduction <add>, %127, %cst_68 [1] : vector<16x256xf32> to vector<16xf32>
    %129 = vector.shape_cast %128 : vector<16xf32> to vector<16x1xf32>
    %130 = arith.addf %83, %129 : vector<16x1xf32>
    %cst_69 = arith.constant 0.001953125 : f32
    %131 = vector.broadcast %cst_69 : f32 to vector<16x1xf32>
    %132 = arith.mulf %126, %131 : vector<16x1xf32>
    %cst_70 = arith.constant 0.001953125 : f32
    %133 = vector.broadcast %cst_70 : f32 to vector<16x1xf32>
    %134 = arith.mulf %130, %133 : vector<16x1xf32>
    %135 = arith.mulf %132, %132 : vector<16x1xf32>
    %136 = arith.subf %134, %135 : vector<16x1xf32>
    %cst_71 = arith.constant 0.000000e+00 : f32
    %137 = vector.broadcast %cst_71 : f32 to vector<16x1xf32>
    %138 = arith.maximumf %136, %137 : vector<16x1xf32>
    %c0_72 = arith.constant 0 : index
    %c0_73 = arith.constant 0 : index
    %c0_74 = arith.constant 0 : index
    %139 = vector.load %arg2[%c0_72, %c0_73, %c0_74] : memref<2x16x1xf32, #tpu.memory_space<vmem>>, vector<1x16x1xf32>
    %140 = vector.shape_cast %139 : vector<1x16x1xf32> to vector<16x1xf32>
    %cst_75 = arith.constant 9.99999974E-6 : f32
    %141 = vector.broadcast %cst_75 : f32 to vector<16x1xf32>
    %142 = arith.addf %138, %141 : vector<16x1xf32>
    %143 = math.rsqrt %142 : vector<16x1xf32>
    %144 = arith.mulf %140, %143 : vector<16x1xf32>
    %c1_76 = arith.constant 1 : index
    %c0_77 = arith.constant 0 : index
    %c0_78 = arith.constant 0 : index
    %145 = vector.load %arg2[%c1_76, %c0_77, %c0_78] : memref<2x16x1xf32, #tpu.memory_space<vmem>>, vector<1x16x1xf32>
    %146 = vector.shape_cast %145 : vector<1x16x1xf32> to vector<16x1xf32>
    %147 = arith.mulf %132, %144 : vector<16x1xf32>
    %148 = arith.subf %146, %147 : vector<16x1xf32>
    %149 = vector.broadcast %144 : vector<16x1xf32> to vector<16x256xf32>
    %150 = arith.mulf %76, %149 : vector<16x256xf32>
    %151 = vector.broadcast %148 : vector<16x1xf32> to vector<16x256xf32>
    %152 = arith.addf %150, %151 : vector<16x256xf32>
    %cst_79 = arith.constant 0.000000e+00 : f32
    %153 = vector.broadcast %cst_79 : f32 to vector<16x256xf32>
    %154 = arith.maximumf %152, %153 : vector<16x256xf32>
    %155 = vector.extract_strided_slice %154 {offsets = [0, 0], sizes = [8, 256], strides = [1, 1]} : vector<16x256xf32> to vector<8x256xf32>
    %156 = vector.extract_strided_slice %154 {offsets = [8, 0], sizes = [8, 256], strides = [1, 1]} : vector<16x256xf32> to vector<8x256xf32>
    %157 = arith.addf %155, %156 : vector<8x256xf32>
    %c0_80 = arith.constant 0 : index
    %c0_81 = arith.constant 0 : index
    %c0_82 = arith.constant 0 : index
    %158 = vector.load %arg3[%c0_80, %c0_81, %c0_82] : memref<2x8x256xf32, #tpu.memory_space<vmem>>, vector<1x8x256xf32>
    %159 = vector.shape_cast %158 : vector<1x8x256xf32> to vector<8x256xf32>
    %160 = vector.shape_cast %157 : vector<8x256xf32> to vector<1x8x256xf32>
    tpu.vector_store %arg3[%c0_80, %c0_81, %c0_82], %160 {strides = array<i32>} : memref<2x8x256xf32, #tpu.memory_space<vmem>>, vector<1x8x256xf32>,
    %161 = vector.broadcast %144 : vector<16x1xf32> to vector<16x256xf32>
    %162 = arith.mulf %123, %161 : vector<16x256xf32>
    %163 = vector.broadcast %148 : vector<16x1xf32> to vector<16x256xf32>
    %164 = arith.addf %162, %163 : vector<16x256xf32>
    %cst_83 = arith.constant 0.000000e+00 : f32
    %165 = vector.broadcast %cst_83 : f32 to vector<16x256xf32>
    %166 = arith.maximumf %164, %165 : vector<16x256xf32>
    %167 = vector.extract_strided_slice %166 {offsets = [0, 0], sizes = [8, 256], strides = [1, 1]} : vector<16x256xf32> to vector<8x256xf32>
    %168 = vector.extract_strided_slice %166 {offsets = [8, 0], sizes = [8, 256], strides = [1, 1]} : vector<16x256xf32> to vector<8x256xf32>
    %169 = arith.addf %167, %168 : vector<8x256xf32>
    %c1_84 = arith.constant 1 : index
    %c0_85 = arith.constant 0 : index
    %c0_86 = arith.constant 0 : index
    %170 = vector.load %arg3[%c1_84, %c0_85, %c0_86] : memref<2x8x256xf32, #tpu.memory_space<vmem>>, vector<1x8x256xf32>
    %171 = vector.shape_cast %170 : vector<1x8x256xf32> to vector<8x256xf32>
    %172 = vector.shape_cast %169 : vector<8x256xf32> to vector<1x8x256xf32>
    tpu.vector_store %arg3[%c1_84, %c0_85, %c0_86], %172 {strides = array<i32>} : memref<2x8x256xf32, #tpu.memory_space<vmem>>, vector<1x8x256xf32>,
    return
  }
}

</mosaic_0001>

<bundles_post_ra>
// kernel: double13_forward.1
= control target key start
LH: loop header
LB: loop body
LE: loop exit
PB: predicated region body
PF: predicated region fallthrough
CT: control target
= control target key end

     0   :  { %v1075_v0 = vmov 0.0   ;;  %v1076_v9 = vmov 0   ;;  %s1077_s16 = smov 127   ;;  %s1078_s17 = smov 1   ;;  %vm152_vm0 = vcmask 130048   ;;  %v15_v17 = vlaneseq  ;;  %s1358_s0 = inlined_call_operand.vmem [shape: f32[2,4,256], index: 0, kind: input, shape index: {}]   ;;  %s1359_s1 = inlined_call_operand.vmem [shape: bf16[5,16,16], index: 1, kind: input, shape index: {}]   ;;  %s1360_s2 = inlined_call_operand.vmem [shape: f32[2,16,1], index: 2, kind: input, shape index: {}]   ;;  %s1361_s3 = inlined_call_operand.vmem [shape: f32[2,8,256], index: 3, kind: output, shape index: {}]  }
   0x1   :  { %66 = vst [vmem:[#allocation2] sm:$0xff] %v1075_v0  ;;  %v70_v1 = vld [vmem:[%s1358_s0] sm:$0xff]  ;;  %67 = vst [vmem:[#allocation2 + $0x8] sm:$0xff] %v1075_v0  ;;  %v948_v3 = vld [vmem:[%s1358_s0 + $0x8] sm:$0xff]  ;;  %243 = vmatprep.mubr.bf16.mxu1 %v1076_v9  ;;  %188 = vmatprep.mubr.bf16.mxu0 %v1076_v9  ;;  %s1079_s19 = smov 16   ;;  %s1080_s20 = smov 112  }
   0x2   :  { %74 = vst [vmem:[#allocation2] sm:$0xf] %v70_v1  ;;  %v72_v2 = vcombine.high %v70_v1, %v70_v1  ;;  %v463_v4 = vcombine.high %v948_v3, %v948_v3  ;;  %v1061_v12 = vld [vmem:[%s1359_s1] sm:$0xff]   ;;  %1057 = vset.pattern.permute.xlu1 %v1076_v9  ;;  %1058 = vset.pattern.permute.xlu0 %v1076_v9  ;;  %v1130_v20 = vand.u32 127, %v15_v17  ;;  %v1062_v50 = vld [vmem:[%s1359_s1 + $0x8] sm:$0xff]  }
   0x4   :  { %75 = vst [vmem:[#allocation2 + $0x8] sm:$0xf] %v72_v2  ;;  %vm105_vm1 = vcmp.lt.s32.totalorder %v1130_v20, 127  ;;  %vm90_vm2 = vcmp.lt.s32.totalorder %v1130_v20, 1  ;;  %vm120_vm3 = vcmp.lt.s32.totalorder %v1130_v20, 16  ;;  %vm135_vm4 = vcmp.lt.s32.totalorder %v1130_v20, 112 }
   0x5   :  { %vm54_vm7 = vcmp.ge.s32.totalorder %v1130_v20, 16 }
   0x9   :  { %v76_v5 = vld [vmem:[#allocation2] sm:$0xff] }
   0xa   :  { %v987_v6 = vpack.i.bf16 %v1075_v0, %v76_v5  ;;  %465 = vst [vmem:[#allocation2] sm:$0xf] %v948_v3  ;;  %v80_v8 = vpack.c.bf16 %v1075_v0, %v76_v5 }
   0xb   :  { %v77_v7 = vld [vmem:[#allocation2 + $0x8] sm:$0xff] }
   0xc   :  { %988 = vrot.lane.b32.xlu1 %v987_v6, %s1077_s16  ;;  %978 = vrot.lane.b32.xlu0 %v987_v6, %s1078_s17  ;;  %v1002_v10 = vpack.i.bf16 %v1075_v0, %v77_v7  ;;  %466 = vst [vmem:[#allocation2 + $0x8] sm:$0xf] %v463_v4  ;;  %v81_v11 = vpack.c.bf16 %v1075_v0, %v77_v7 }
   0xe   :  { %211 = vmatprep.subr.bf16.mxu1 %v81_v11 }
   0xf   :  { %212 = vmatpush1.bf16.msra.mxu1 %v80_v8 }
  0x10   :  { %1003 = vrot.lane.b32.xlu1 %v1002_v10, %s1077_s16  ;;  %983 = vrot.lane.b32.xlu0 %v1002_v10, %s1078_s17 }
  0x11   :  { %v1122_v13 = vld [vmem:[#allocation2] sm:$0xff] }
  0x12   :  { %935 = vmatmul.mubr.msk.bf16.vlgmr.msra.gmra.mrb[0].mxu1 %vm152_vm0, %v1061_v12  ;;  %v1017_v15 = vpack.i.bf16 %v1075_v0, %v1122_v13 }
  0x13   :  { %359 = vmatprep.mubr.bf16.mxu1 %v1076_v9  ;;  %v1124_v14 = vld [vmem:[#allocation2 + $0x8] sm:$0xff] }
  0x14   :  { %1008 = vrot.lane.b32.xlu1 %v1002_v10, %s1079_s19  ;;  %993 = vrot.lane.b32.xlu0 %v987_v6, %s1079_s19  ;;  %v1022_v16 = vpack.i.bf16 %v1075_v0, %v1124_v14 }
  0x18   :  { %1013 = vrot.lane.b32.xlu1 %v1002_v10, %s1080_s20  ;;  %998 = vrot.lane.b32.xlu0 %v987_v6, %s1080_s20  ;;  %v1063_v6 = vld [vmem:[%s1359_s1 + $0x18] sm:$0xff]  }
  0x1c   :  { %1018 = vrot.lane.b32.xlu0 %v1017_v15, %s1078_s17  ;;  %1023 = vrot.lane.b32.xlu1 %v1022_v16, %s1078_s17 }
  0x20   :  { %1028 = vrot.lane.b32.xlu0 %v1017_v15, %s1077_s16  ;;  %1038 = vrot.lane.b32.xlu1 %v1022_v16, %s1077_s16 }
  0x24   :  { %1033 = vrot.lane.b32.xlu0 %v1017_v15, %s1079_s19  ;;  %1043 = vrot.lane.b32.xlu1 %v1022_v16, %s1079_s19 }
  0x28   :  { %1048 = vrot.lane.b32.xlu0 %v1017_v15, %s1080_s20  ;;  %1053 = vrot.lane.b32.xlu1 %v1022_v16, %s1080_s20  ;;  %v1064_v16 = vld [vmem:[%s1359_s1 + $0x10] sm:$0xff]  }
  0x7e   :  { %v989_v18 = vpop.permute.xlu1 %988  ;;  %v979_v19 = vpop.permute.xlu0 %978 }
  0x7f   :  { %v991_v21 = vunpack.i.h.bf16 %v989_v18  ;;  %v981_v22 = vunpack.i.h.bf16 %v979_v19  ;;  %v980_v25 = vunpack.i.l.bf16 %v979_v19  ;;  %v990_v29 = vunpack.i.l.bf16 %v989_v18 }
  0x82   :  { %v1004_v23 = vpop.permute.xlu1 %1003  ;;  %v984_v24 = vpop.permute.xlu0 %983 }
  0x83   :  { %v1006_v26 = vunpack.i.h.bf16 %v1004_v23  ;;  %v986_v27 = vunpack.i.h.bf16 %v984_v24  ;;  %v985_v28 = vunpack.i.l.bf16 %v984_v24  ;;  %v1005_v30 = vunpack.i.l.bf16 %v1004_v23 }
  0x85   :  { %v91_v31 = vsel %vm90_vm2, %v980_v25, %v985_v28  ;;  %v92_v32 = vsel %vm90_vm2, %v981_v22, %v986_v27  ;;  %v107_v33 = vsel %vm105_vm1, %v991_v21, %v1006_v26  ;;  %v93_v37 = vsel %vm90_vm2, %v985_v28, %v980_v25 }
  0x86   :  { %v1009_v34 = vpop.permute.xlu1 %1008  ;;  %v994_v35 = vpop.permute.xlu0 %993  ;;  %v96_v36 = vpack.c.bf16 %v92_v32, %v91_v31  ;;  %v94_v38 = vsel %vm90_vm2, %v986_v27, %v981_v22  ;;  %v106_v43 = vsel %vm105_vm1, %v990_v29, %v1005_v30  ;;  %v108_v45 = vsel %vm105_vm1, %v1005_v30, %v990_v29 }
  0x87   :  { %v1011_v39 = vunpack.i.h.bf16 %v1009_v34  ;;  %v1010_v40 = vunpack.i.l.bf16 %v1009_v34  ;;  %v996_v41 = vunpack.i.h.bf16 %v994_v35  ;;  %v995_v42 = vunpack.i.l.bf16 %v994_v35  ;;  %v1065_v35 = vld [vmem:[%s1359_s1 + $0x8] sm:$0xff]  }
  0x88   :  { %156 = vmatprep.subr.bf16.mxu0 %v96_v36  ;;  %v95_v44 = vpack.c.bf16 %v94_v38, %v93_v37  ;;  %v109_v46 = vsel %vm105_vm1, %v1006_v26, %v991_v21  ;;  %v110_v60 = vpack.c.bf16 %v107_v33, %v106_v43  ;;  %v472_v25 = vpack.c.bf16 %v1075_v0, %v1124_v14 }
  0x89   :  { %v124_v47 = vsel %vm120_vm3, %v1011_v39, %v996_v41  ;;  %v123_v48 = vsel %vm120_vm3, %v1010_v40, %v995_v42  ;;  %v111_v49 = vpack.c.bf16 %v109_v46, %v108_v45  ;;  %v121_v51 = vsel %vm120_vm3, %v995_v42, %v1010_v40  ;;  %v1066_v42 = vld [vmem:[%s1359_s1 + $0x20] sm:$0xff]  }
  0x8a   :  { %v125_v52 = vpack.c.bf16 %v124_v47, %v123_v48  ;;  %157 = vmatpush1.bf16.msra.mxu0 %v95_v44  ;;  %v1014_v53 = vpop.permute.xlu1 %1013  ;;  %v999_v54 = vpop.permute.xlu0 %998  ;;  %v122_v55 = vsel %vm120_vm3, %v996_v41, %v1011_v39  ;;  %v471_v45 = vpack.c.bf16 %v1075_v0, %v1122_v13 }
  0x8b   :  { %v1016_v56 = vunpack.i.h.bf16 %v1014_v53  ;;  %v1015_v57 = vunpack.i.l.bf16 %v1014_v53  ;;  %v1001_v58 = vunpack.i.h.bf16 %v999_v54  ;;  %v1000_v59 = vunpack.i.l.bf16 %v999_v54  ;;  %265 = vmatprep.subr.bf16.mxu0 %v111_v49 }
  0x8c   :  { %v126_v61 = vpack.c.bf16 %v122_v55, %v121_v51 }
  0x8d   :  { %933 = vmatmul.mubr.msk.bf16.vlgmr.msra.gmra.mrb[0].mxu0 %vm152_vm0, %v1062_v50  ;;  %v138_v62 = vsel %vm135_vm4, %v1015_v57, %v1000_v59  ;;  %v139_v63 = vsel %vm135_vm4, %v1016_v56, %v1001_v58  ;;  %v137_v1 = vsel %vm135_vm4, %v1001_v58, %v1016_v56  ;;  %v136_v2 = vsel %vm135_vm4, %v1000_v59, %v1015_v57  ;;  %v1067_v56 = vld [vmem:[%s1359_s1 + $0x10] sm:$0xff]  }
  0x8e   :  { %327 = vmatprep.subr.bf16.mxu1 %v126_v61  ;;  %266 = vmatpush1.bf16.msra.mxu0 %v110_v60  ;;  %v1019_v3 = vpop.permute.xlu0 %1018  ;;  %v1024_v4 = vpop.permute.xlu1 %1023  ;;  %v141_v5 = vpack.c.bf16 %v139_v63, %v138_v62  ;;  %v140_v19 = vpack.c.bf16 %v137_v1, %v136_v2  ;;  %v1068_v61 = vld [vmem:[%s1359_s1] sm:$0xff]   ;;  %v1070_v1 = vld [vmem:[%s1359_s1 + $0x18] sm:$0xff]  }
  0x8f   :  { %328 = vmatpush1.bf16.msra.mxu1 %v125_v52  ;;  %v1021_v7 = vunpack.i.h.bf16 %v1019_v3  ;;  %v1020_v8 = vunpack.i.l.bf16 %v1019_v3  ;;  %v1026_v10 = vunpack.i.h.bf16 %v1024_v4  ;;  %v1025_v11 = vunpack.i.l.bf16 %v1024_v4  ;;  %297 = vmatprep.mubr.bf16.mxu0 %v1076_v9  ;;  %v1069_v63 = vld [vmem:[%s1359_s1 + $0x20] sm:$0xff]  }
  0x90   :  { %389 = vmatprep.subr.bf16.mxu0 %v141_v5 }
  0x91   :  { %v484_v12 = vsel %vm90_vm2, %v1026_v10, %v1021_v7  ;;  %v483_v15 = vsel %vm90_vm2, %v1025_v11, %v1020_v8  ;;  %v481_v17 = vsel %vm90_vm2, %v1020_v8, %v1025_v11  ;;  %v482_v18 = vsel %vm90_vm2, %v1021_v7, %v1026_v10 }
  0x92   :  { %v485_v21 = vpack.c.bf16 %v484_v12, %v483_v15  ;;  %943 = vmatmul.mubr.msk.bf16.vlgmr.msra.gmra.mrb[4].mxu1 %vm152_vm0, %v1063_v6  ;;  %v486_v22 = vpack.c.bf16 %v482_v18, %v481_v17  ;;  %v1029_v23 = vpop.permute.xlu0 %1028  ;;  %v1039_v24 = vpop.permute.xlu1 %1038  ;;  %v17_v6 = vadd.s32 128, %v1130_v20 }
  0x93   :  { %v1031_v26 = vunpack.i.h.bf16 %v1029_v23  ;;  %v1030_v27 = vunpack.i.l.bf16 %v1029_v23  ;;  %v1041_v28 = vunpack.i.h.bf16 %v1039_v24  ;;  %v1040_v29 = vunpack.i.l.bf16 %v1039_v24  ;;  %573 = vmatprep.mubr.bf16.mxu1 %v1076_v9 }
  0x94   :  { %541 = vmatprep.subr.bf16.mxu1 %v486_v22  ;;  %v29_v7 = vand.u32 15, %v17_v6  ;;  %vm61_vm10 = vcmp.lt.s32.totalorder %v17_v6, 240 }
  0x95   :  { %939 = vmatmul.mubr.msk.bf16.vlgmr.msra.gmra.mrb[4].mxu0 %vm152_vm0, %v1064_v16  ;;  %542 = vmatpush1.bf16.msra.mxu1 %v485_v21  ;;  %v496_v30 = vsel %vm105_vm1, %v1031_v26, %v1041_v28  ;;  %v495_v31 = vsel %vm105_vm1, %v1030_v27, %v1040_v29  ;;  %v497_v32 = vsel %vm105_vm1, %v1040_v29, %v1030_v27  ;;  %v1261_v27 = vsel %vm54_vm7, 1.0, %v1075_v0 }
  0x96   :  { %390 = vmatpush1.bf16.msra.mxu0 %v140_v19  ;;  %v499_v14 = vpack.c.bf16 %v496_v30, %v495_v31  ;;  %v1034_v33 = vpop.permute.xlu0 %1033  ;;  %v1044_v34 = vpop.permute.xlu1 %1043  ;;  %421 = vmatprep.mubr.bf16.mxu0 %v1076_v9  ;;  %v498_v36 = vsel %vm105_vm1, %v1041_v28, %v1031_v26  ;;  %vm43_vm6 = vcmp.gt.s32.totalorder %v29_v7, 0  ;;  %vm49_vm9 = vcmp.lt.s32.totalorder %v29_v7, 15 }
  0x97   :  { %v1036_v37 = vunpack.i.h.bf16 %v1034_v33  ;;  %v1035_v38 = vunpack.i.l.bf16 %v1034_v33  ;;  %v1046_v39 = vunpack.i.h.bf16 %v1044_v34  ;;  %v1045_v40 = vunpack.i.l.bf16 %v1044_v34  ;;  %596 = vmatprep.subr.bf16.mxu0 %v472_v25 }
  0x98   :  { %v500_v41 = vpack.c.bf16 %v498_v36, %v497_v32  ;;  %v1253_v10 = vsel %vm43_vm6, 1.0, %v1075_v0  ;;  %v1265_v30 = vsel %vm49_vm9, 1.0, %v1075_v0 }
  0x99   :  { %v509_v43 = vsel %vm120_vm3, %v1035_v38, %v1045_v40  ;;  %v510_v44 = vsel %vm120_vm3, %v1036_v37, %v1046_v39  ;;  %v512_v58 = vsel %vm120_vm3, %v1046_v39, %v1036_v37  ;;  %v511_v59 = vsel %vm120_vm3, %v1045_v40, %v1035_v38 }
  0x9a   :  { %952 = vmatmul.mubr.msk.bf16.vlgmr.msra.gmra.mrb[8].mxu1 %vm152_vm0, %v1065_v35  ;;  %649 = vmatprep.subr.bf16.mxu1 %v500_v41  ;;  %v1049_v46 = vpop.permute.xlu0 %1048  ;;  %v1054_v47 = vpop.permute.xlu1 %1053  ;;  %v514_v48 = vpack.c.bf16 %v510_v44, %v509_v43  ;;  %v513_v62 = vpack.c.bf16 %v512_v58, %v511_v59 }
  0x9b   :  { %650 = vmatpush1.bf16.msra.mxu1 %v499_v14  ;;  %v1051_v49 = vunpack.i.h.bf16 %v1049_v46  ;;  %v1050_v50 = vunpack.i.l.bf16 %v1049_v46  ;;  %v1056_v51 = vunpack.i.h.bf16 %v1054_v47  ;;  %v1055_v52 = vunpack.i.l.bf16 %v1054_v47  ;;  %681 = vmatprep.mubr.bf16.mxu1 %v1076_v9 }
  0x9d   :  { %947 = vmatmul.mubr.msk.bf16.vlgmr.msra.gmra.mrb[8].mxu0 %vm152_vm0, %v1066_v42  ;;  %v524_v53 = vsel %vm135_vm4, %v1051_v49, %v1056_v51  ;;  %v523_v54 = vsel %vm135_vm4, %v1050_v50, %v1055_v52  ;;  %v525_v13 = vsel %vm135_vm4, %v1055_v52, %v1050_v50  ;;  %v526_v55 = vsel %vm135_vm4, %v1056_v51, %v1051_v49 }
  0x9e   :  { %597 = vmatpush1.bf16.msra.mxu0 %v471_v45  ;;  %628 = vmatprep.mubr.bf16.mxu0 %v1076_v9  ;;  %v528_v57 = vpack.c.bf16 %v526_v55, %v525_v13  ;;  %v527_v60 = vpack.c.bf16 %v524_v53, %v523_v54  ;;  %v1272_v49 = vsel %vm61_vm10, 1.0, %v1075_v0 }
  0x9f   :  { %710 = vmatprep.subr.bf16.mxu0 %v514_v48 }
  0xa0   :  { %771 = vmatprep.subr.bf16.mxu1 %v528_v57 }
  0xa2   :  { %958 = vmatmul.mubr.msk.bf16.vlgmr.msra.gmra.mrb[12].mxu1 %vm152_vm0, %v1067_v56 }
  0xa3   :  { %772 = vmatpush1.bf16.msra.mxu1 %v527_v60  ;;  %803 = vmatprep.mubr.bf16.mxu1 %v1076_v9 }
  0xa5   :  { %954 = vmatmul.mubr.msk.bf16.vlgmr.msra.gmra.mrb[12].mxu0 %vm152_vm0, %v1068_v61 }
  0xa6   :  { %711 = vmatpush1.bf16.msra.mxu0 %v513_v62  ;;  %742 = vmatprep.mubr.bf16.mxu0 %v1076_v9  ;;  %v22_v9 = vand.u32 15, %v1130_v20 }
  0xa8   :  { %vm42_vm5 = vcmp.gt.s32.totalorder %v22_v9, 0  ;;  %vm48_vm8 = vcmp.lt.s32.totalorder %v22_v9, 15 }
  0xa9   :  { %v1250_v8 = vsel %vm42_vm5, 1.0, %v1075_v0  ;;  %v926_v28 = vsel %vm48_vm8, 1.0, %v1075_v0 }
  0xaa   :  { %966 = vmatmul.mubr.msk.bf16.vlgmr.msra.gmra.mrb[16].mxu1 %vm152_vm0, %v1069_v63 }
  0xad   :  { %962 = vmatmul.mubr.msk.bf16.vlgmr.msra.gmra.mrb[16].mxu0 %vm152_vm0, %v1070_v1 }
  0xe5   :  { %v245_v2 = vpop.f32.mrb[0].mxu1 }
  0xe6   :  { %v247_v3 = vpop.f32.mrb[1].mxu1 }
  0xe7   :  { %v249_v4 = vpop.f32.mrb[2].mxu1 }
  0xe8   :  { %v251_v5 = vpop.f32.mrb[3].mxu1 }
 0x160   :  { %v190_v11 = vpop.f32.mrb[0].mxu0 }
 0x161   :  { %v199_v12 = vmul.f32 %v1250_v8, %v190_v11  ;;  %v192_v15 = vpop.f32.mrb[1].mxu0 }
 0x162   :  { %v200_v16 = vmul.f32 %v1253_v10, %v192_v15  ;;  %v194_v17 = vpop.f32.mrb[2].mxu0 }
 0x163   :  { %v246_v18 = vadd.f32 %v245_v2, %v199_v12  ;;  %v201_v19 = vmul.f32 %v1250_v8, %v194_v17  ;;  %v196_v21 = vpop.f32.mrb[3].mxu0 }
 0x164   :  { %v248_v22 = vadd.f32 %v247_v3, %v200_v16  ;;  %v202_v23 = vmul.f32 %v1253_v10, %v196_v21 }
 0x165   :  { %v250_v24 = vadd.f32 %v249_v4, %v201_v19  ;;  %v361_v25 = vpop.f32.mrb[4].mxu1 }
 0x166   :  { %v252_v26 = vadd.f32 %v251_v5, %v202_v23  ;;  %v363_v29 = vpop.f32.mrb[5].mxu1  ;;  %v370_v14 = vmul.f32 %v1261_v27, %v361_v25 }
 0x167   :  { %v365_v31 = vpop.f32.mrb[6].mxu1 }
 0x168   :  { %v299_v32 = vpop.f32.mrb[4].mxu0  ;;  %v367_v20 = vpop.f32.mrb[7].mxu1  ;;  %v372_v42 = vmul.f32 %v1261_v27, %v365_v31 }
 0x169   :  { %v308_v33 = vmul.f32 %v926_v28, %v299_v32  ;;  %v301_v34 = vpop.f32.mrb[5].mxu0 }
 0x16a   :  { %v309_v35 = vmul.f32 %v1265_v30, %v301_v34  ;;  %v303_v36 = vpop.f32.mrb[6].mxu0 }
 0x16b   :  { %v312_v37 = vadd.f32 %v308_v33, %v246_v18  ;;  %v310_v38 = vmul.f32 %v926_v28, %v303_v36  ;;  %v305_v39 = vpop.f32.mrb[7].mxu0 }
 0x16c   :  { %v313_v40 = vadd.f32 %v309_v35, %v248_v22  ;;  %v311_v41 = vmul.f32 %v1265_v30, %v305_v39 }
 0x16d   :  { %v314_v43 = vadd.f32 %v310_v38, %v250_v24  ;;  %v575_v44 = vpop.f32.mrb[8].mxu1  ;;  %v374_v45 = vadd.f32 %v370_v14, %v312_v37 }
 0x16e   :  { %v315_v46 = vadd.f32 %v311_v41, %v252_v26  ;;  %v577_v47 = vpop.f32.mrb[9].mxu1  ;;  %v375_v48 = vadd.f32 %v363_v29, %v313_v40  ;;  %v584_v2 = vmul.f32 %v1250_v8, %v575_v44 }
 0x16f   :  { %v579_v50 = vpop.f32.mrb[10].mxu1  ;;  %v376_v51 = vadd.f32 %v372_v42, %v314_v43  ;;  %v585_v3 = vmul.f32 %v1253_v10, %v577_v47 }
 0x170   :  { %v423_v52 = vpop.f32.mrb[8].mxu0  ;;  %v581_v53 = vpop.f32.mrb[11].mxu1  ;;  %v377_v54 = vadd.f32 %v367_v20, %v315_v46  ;;  %v586_v17 = vmul.f32 %v1250_v8, %v579_v50 }
 0x171   :  { %v1274_v13 = vadd.f32 %v423_v52, %v374_v45  ;;  %v425_v55 = vpop.f32.mrb[9].mxu0  ;;  %v587_v22 = vmul.f32 %v1253_v10, %v581_v53 }
 0x172   :  { %v433_v56 = vmul.f32 %v1272_v49, %v425_v55  ;;  %v427_v57 = vpop.f32.mrb[10].mxu0 }
 0x173   :  { %v1277_v58 = vadd.f32 %v427_v57, %v376_v51  ;;  %v429_v59 = vpop.f32.mrb[11].mxu0  ;;  %v448_v26 = vmul.f32 %v1274_v13, %v1274_v13 }
 0x174   :  { %v1279_v60 = vadd.f32 %v433_v56, %v375_v48  ;;  %v435_v61 = vmul.f32 %v1272_v49, %v429_v59 }
 0x175   :  { %v683_v0 = vpop.f32.mrb[12].mxu1  ;;  %v450_v6 = vmul.f32 %v1277_v58, %v1277_v58 }
 0x176   :  { %v1282_v62 = vadd.f32 %v435_v61, %v377_v54  ;;  %v685_v63 = vpop.f32.mrb[13].mxu1  ;;  %v440_v1 = vadd.f32 %v1279_v60, %v1274_v13  ;;  %v692_v4 = vmul.f32 %v926_v28, %v683_v0  ;;  %v449_v16 = vmul.f32 %v1279_v60, %v1279_v60 }
 0x177   :  { %v687_v5 = vpop.f32.mrb[14].mxu1  ;;  %v693_v7 = vmul.f32 %v1265_v30, %v685_v63 }
 0x178   :  { %v630_v9 = vpop.f32.mrb[12].mxu0  ;;  %441 = vadd.xlane.f32.xlu0 %v440_v1  ;;  %v689_v11 = vpop.f32.mrb[15].mxu1  ;;  %v443_v12 = vadd.f32 %v1282_v62, %v1277_v58  ;;  %v451_v15 = vmul.f32 %v1282_v62, %v1282_v62  ;;  %v694_v21 = vmul.f32 %v926_v28, %v687_v5  ;;  %v452_v8 = vadd.f32 %v449_v16, %v448_v26 }
 0x179   :  { %v631_v18 = vadd.f32 %v630_v9, %v584_v2  ;;  %v632_v19 = vpop.f32.mrb[13].mxu0  ;;  %v695_v20 = vmul.f32 %v1265_v30, %v689_v11 }
 0x17a   :  { %v633_v23 = vadd.f32 %v632_v19, %v585_v3  ;;  %v634_v24 = vpop.f32.mrb[14].mxu0  ;;  %444 = vadd.xlane.f32.xlu1 %v443_v12  ;;  %v455_v25 = vadd.f32 %v451_v15, %v450_v6 }
 0x17b   :  { %v696_v29 = vadd.f32 %v692_v4, %v631_v18  ;;  %v635_v31 = vadd.f32 %v634_v24, %v586_v17  ;;  %v636_v32 = vpop.f32.mrb[15].mxu0 }
 0x17c   :  { %v637_v14 = vadd.f32 %v636_v32, %v587_v22  ;;  %456 = vadd.xlane.f32.xlu0 %v455_v25  ;;  %v697_v33 = vadd.f32 %v693_v7, %v633_v23 }
 0x17d   :  { %v698_v34 = vadd.f32 %v694_v21, %v635_v31  ;;  %v805_v28 = vpop.f32.mrb[16].mxu1  ;;  %v852_v31 = vld [vmem:[%s1360_s2] sm:$0xff] }
 0x17e   :  { %453 = vadd.xlane.f32.xlu1 %v452_v8  ;;  %v807_v10 = vpop.f32.mrb[17].mxu1  ;;  %v699_v35 = vadd.f32 %v695_v20, %v637_v14  ;;  %v967_v14 = vld [vmem:[%s1360_s2 + $0x10] sm:$0xff] }
 0x17f   :  { %v809_v36 = vpop.f32.mrb[18].mxu1  ;;  %v815_v38 = vmul.f32 %v1272_v49, %v807_v10 }
 0x180   :  { %v744_v37 = vpop.f32.mrb[16].mxu0  ;;  %v811_v39 = vpop.f32.mrb[19].mxu1 }
 0x181   :  { %v753_v40 = vmul.f32 %v1261_v27, %v744_v37  ;;  %v746_v41 = vpop.f32.mrb[17].mxu0  ;;  %v817_v47 = vmul.f32 %v1272_v49, %v811_v39 }
 0x182   :  { %v758_v42 = vadd.f32 %v746_v41, %v697_v33  ;;  %v748_v43 = vpop.f32.mrb[18].mxu0  ;;  %v853_v33 = vld [vmem:[%s1360_s2 + $0x8] sm:$0xff] }
 0x183   :  { %v757_v30 = vadd.f32 %v753_v40, %v696_v29  ;;  %v755_v44 = vmul.f32 %v1261_v27, %v748_v43  ;;  %v750_v45 = vpop.f32.mrb[19].mxu0 }
 0x184   :  { %v1305_v46 = vadd.f32 %v815_v38, %v758_v42  ;;  %v760_v48 = vadd.f32 %v750_v45, %v699_v35  ;;  %v968_v35 = vld [vmem:[%s1360_s2 + $0x18] sm:$0xff] }
 0x185   :  { %v1308_v50 = vadd.f32 %v805_v28, %v757_v30  ;;  %v759_v51 = vadd.f32 %v755_v44, %v698_v34 }
 0x186   :  { %v1310_v52 = vadd.f32 %v817_v47, %v760_v48  ;;  %v831_v53 = vmul.f32 %v1305_v46, %v1305_v46 }
 0x187   :  { %v1314_v54 = vadd.f32 %v809_v36, %v759_v51  ;;  %v822_v55 = vadd.f32 %v1305_v46, %v1308_v50  ;;  %v830_v27 = vmul.f32 %v1308_v50, %v1308_v50 }
 0x188   :  { %v833_v59 = vmul.f32 %v1310_v52, %v1310_v52 }
 0x189   :  { %823 = vadd.xlane.f32.xlu0 %v822_v55  ;;  %v834_v56 = vadd.f32 %v831_v53, %v830_v27  ;;  %v825_v49 = vadd.f32 %v1310_v52, %v1314_v54  ;;  %v832_v57 = vmul.f32 %v1314_v54, %v1314_v54 }
 0x18b   :  { %835 = vadd.xlane.f32.xlu1 %v834_v56  ;;  %v837_v61 = vadd.f32 %v833_v59, %v832_v57 }
 0x18d   :  { %826 = vadd.xlane.f32.xlu0 %v825_v49 }
 0x191   :  { %838 = vadd.xlane.f32.xlu0 %v837_v61 }
 0x205   :  { %v442_v0 = vpop.xlane.xlu0 %441 }
 0x207   :  { %v445_v63 = vpop.xlane.xlu1 %444 }
 0x209   :  { %v457_v1 = vpop.xlane.xlu0 %456 }
 0x20b   :  { %v454_v2 = vpop.xlane.xlu1 %453 }
 0x216   :  { %v824_v3 = vpop.xlane.xlu0 %823 }
 0x217   :  { %v828_v4 = vadd.f32 %v824_v3, %v442_v0 }
 0x218   :  { %v836_v5 = vpop.xlane.xlu1 %835 }
 0x219   :  { %v842_v6 = vmul.f32 0.001953125, %v828_v4  ;;  %v840_v9 = vadd.f32 %v836_v5, %v454_v2 }
 0x21a   :  { %v827_v7 = vpop.xlane.xlu0 %826 }
 0x21b   :  { %v846_v11 = vmul.f32 %v842_v6, %v842_v6  ;;  %v844_v12 = vmul.f32 0.001953125, %v840_v9  ;;  %v829_v15 = vadd.f32 %v827_v7, %v445_v63 }
 0x21d   :  { %v848_v16 = vsub.f32 %v844_v12, %v846_v11  ;;  %v843_v17 = vmul.f32 0.001953125, %v829_v15 }
 0x21e   :  { %v839_v18 = vpop.xlane.xlu0 %838 }
 0x21f   :  { %v850_v19 = vmax.f32 %v848_v16, 0.0  ;;  %v841_v21 = vadd.f32 %v839_v18, %v457_v1  ;;  %v847_v23 = vmul.f32 %v843_v17, %v843_v17 }
 0x221   :  { %v854_v22 = vadd.f32 1e-05, %v850_v19  ;;  %v845_v24 = vmul.f32 0.001953125, %v841_v21 }
 0x223   :  { %1071 = vrsqrt.f32 %v854_v22  ;;  %v849_v25 = vsub.f32 %v845_v24, %v847_v23 }
 0x225   :  { %v851_v26 = vmax.f32 %v849_v25, 0.0 }
 0x227   :  { %v855_v29 = vadd.f32 1e-05, %v851_v26 }
 0x229   :  { %1073 = vrsqrt.f32 %v855_v29 }
 0x22d   :  { %v1072_v32 = vpop.eup %1071 }
 0x22e   :  { %v858_v20 = vmul.f32 %v1072_v32, %v852_v31 }
 0x230   :  { %869 = vperm.xlu1 %1057, %v858_v20   ;;  %v863_v8 = vmul.f32 %v858_v20, %v842_v6 }
 0x232   :  { %v865_v34 = vsub.f32 %v967_v14, %v863_v8 }
 0x233   :  { %v1074_v28 = vpop.eup %1073 }
 0x234   :  { %883 = vperm.xlu1 %1057, %v865_v34   ;;  %v859_v10 = vmul.f32 %v1074_v28, %v853_v33 }
 0x236   :  { %874 = vperm.xlu0 %1058, %v859_v10   ;;  %v864_v36 = vmul.f32 %v859_v10, %v843_v17 }
 0x238   :  { %v866_v37 = vsub.f32 %v968_v35, %v864_v36 }
 0x23a   :  { %888 = vperm.xlu1 %1057, %v866_v37  }
 0x2af   :  { %v870_v38 = vpop.permute.xlu1 %869 }
 0x2b0   :  { %v877_v40 = vmul.f32 %v870_v38, %v1274_v13  ;;  %v878_v41 = vmul.f32 %v870_v38, %v1279_v60  ;;  %v903_v42 = vmul.f32 %v870_v38, %v1308_v50  ;;  %v904_v43 = vmul.f32 %v870_v38, %v1305_v46 }
 0x2b3   :  { %v884_v39 = vpop.permute.xlu1 %883 }
 0x2b4   :  { %v891_v44 = vadd.f32 %v884_v39, %v877_v40  ;;  %v892_v45 = vadd.f32 %v884_v39, %v878_v41  ;;  %v907_v47 = vadd.f32 %v903_v42, %v884_v39  ;;  %v908_v48 = vadd.f32 %v904_v43, %v884_v39 }
 0x2b5   :  { %v875_v30 = vpop.permute.xlu0 %874 }
 0x2b6   :  { %v879_v51 = vmul.f32 %v875_v30, %v1277_v58  ;;  %v880_v53 = vmul.f32 %v875_v30, %v1282_v62  ;;  %v905_v55 = vmul.f32 %v875_v30, %v1314_v54  ;;  %v906_v27 = vmul.f32 %v875_v30, %v1310_v52 }
 0x2b7   :  { %v895_v57 = vmax.f32 %v891_v44, 0.0  ;;  %v896_v46 = vmax.f32 %v892_v45, 0.0  ;;  %v911_v59 = vmax.f32 %v907_v47, 0.0  ;;  %v912_v61 = vmax.f32 %v908_v48, 0.0 }
 0x2b9   :  { %v889_v13 = vpop.permute.xlu1 %888 }
 0x2ba   :  { %v893_v56 = vadd.f32 %v889_v13, %v879_v51  ;;  %v894_v60 = vadd.f32 %v889_v13, %v880_v53  ;;  %v909_v49 = vadd.f32 %v905_v55, %v889_v13  ;;  %v910_v50 = vadd.f32 %v906_v27, %v889_v13 }
 0x2bc   :  { %v897_v0 = vmax.f32 %v893_v56, 0.0  ;;  %v898_v63 = vmax.f32 %v894_v60, 0.0  ;;  %v913_v1 = vmax.f32 %v909_v49, 0.0  ;;  %v914_v2 = vmax.f32 %v910_v50, 0.0 }
 0x2be   :  { %v899_v58 = vadd.f32 %v897_v0, %v895_v57  ;;  %v900_v3 = vadd.f32 %v898_v63, %v896_v46  ;;  %v915_v62 = vadd.f32 %v913_v1, %v911_v59  ;;  %v916_v4 = vadd.f32 %v914_v2, %v912_v61 }
 0x2c0   :  { %901 = vst [vmem:[%s1361_s3] sm:$0xff] %v899_v58  ;;  %902 = vst [vmem:[%s1361_s3 + $0x8] sm:$0xff] %v900_v3 }
 0x2c1   :  { %969 = vst [vmem:[%s1361_s3 + $0x10] sm:$0xff] %v915_v62  ;;  %970 = vst [vmem:[%s1361_s3 + $0x18] sm:$0xff] %v916_v4 }

</bundles_post_ra>
